<compile_context>
chip_gen: v7x
topology: tpu7x:2x2x1
jax: 0.10.0
libtpu: 0.0.40
codegen_flags: <defaults>
</compile_context>

<pallas_src>
from typing import Dict, List

import jax
import jax.numpy as jnp
from jax.experimental import pallas as pl
from jax.experimental.pallas import tpu as pltpu

LANE = 128


def _round_up(x: int, m: int) -> int:
    return ((x + m - 1) // m) * m


# ----------------------------------------------------------------------------
# Fused forward kernel (structure closed over at trace time)
# ----------------------------------------------------------------------------
def _make_fused_kernel(n_keys: int, layers_per_key, feat_widths):
    """Builds the single fused QNetwork forward kernel.

    Ref order: x[key0..], (w,b)*layers per key, wd, bd, wf, bf, o_ref, feat_scratch
    """
    def kernel(*refs):
        ptr = 0
        x_refs = refs[ptr:ptr + n_keys]; ptr += n_keys
        key_layer_refs = []
        for nl in layers_per_key:
            key_layer_refs.append(refs[ptr:ptr + 2 * nl]); ptr += 2 * nl
        wd_ref, bd_ref, wf_ref, bf_ref = refs[ptr:ptr + 4]; ptr += 4
        o_ref = refs[ptr]; ptr += 1
        feat_ref = refs[ptr]                       # VMEM (TM, F_total) f32 scratch

        # ---- KeyExtractor: per-key Linear+ReLU stacks -> columns of feat_ref
        off = 0
        for ki in range(n_keys):
            h = x_refs[ki][...]
            lr = key_layer_refs[ki]
            nl = layers_per_key[ki]
            for li in range(nl):
                w = lr[2 * li][...]                # bf16 (Din, Dout)
                b = lr[2 * li + 1][...]            # f32  (1, Dout)
                h = jnp.dot(h.astype(w.dtype), w,
                            preferred_element_type=jnp.float32) + b
                h = jnp.maximum(h, 0.0)
            if nl == 0:
                # F.relu(feature_extractor(x)) still applies to raw pass-through keys.
                h = jnp.maximum(h, 0.0)
            w_out = feat_widths[ki]
            feat_ref[:, off:off + w_out] = h.astype(jnp.float32)
            off += w_out
        # (outer F.relu on features is redundant: each non-empty stack ends in ReLU)

        # ---- QNetwork head: relu(dense(features)) -> final_layer
        f = feat_ref[...]
        h = jnp.dot(f.astype(wd_ref.dtype), wd_ref[...],
                    preferred_element_type=jnp.float32) + bd_ref[...]
        h = jnp.maximum(h, 0.0)
        q = jnp.dot(h.astype(wf_ref.dtype), wf_ref[...],
                    preferred_element_type=jnp.float32) + bf_ref[...]
        o_ref[...] = q.astype(o_ref.dtype)         # lane-padded (TM, A_pad)

    return kernel


# ----------------------------------------------------------------------------
# Deterministic parameter construction (PyTorch-default Linear init)
# ----------------------------------------------------------------------------
def _init_linear(key, d_in, d_out, *, weight_dtype=jnp.bfloat16, pad_out_to=None):
    kw, kb = jax.random.split(key)
    bound = 1.0 / jnp.sqrt(jnp.float32(d_in))
    w = jax.random.uniform(kw, (d_in, d_out), jnp.float32, -bound, bound)
    b = jax.random.uniform(kb, (1, d_out), jnp.float32, -bound, bound)
    if pad_out_to is not None and pad_out_to > d_out:
        w = jnp.pad(w, ((0, 0), (0, pad_out_to - d_out)))
        b = jnp.pad(b, ((0, 0), (0, pad_out_to - d_out)))
    return w.astype(weight_dtype), b.astype(jnp.float32)


def build_qnetwork_params(
    n_actions: int,
    final_hidden_layers: int,
    keys: List[str],
    kwargs: Dict[str, Dict],
    hidden_layers: Dict[str, List[int]],
    rng_key,
):
    params = {"extractor": {}, "dense": None, "final": None,
              "n_actions": n_actions}
    rng = rng_key
    feat_dim = 0
    for k in keys:
        d_in = kwargs[k]["input_dim"]
        layers = []
        for h in hidden_layers[k]:
            rng, sub = jax.random.split(rng)
            layers.append(_init_linear(sub, d_in, h))
            d_in = h
        params["extractor"][k] = layers
        feat_dim += d_in
    rng, sub = jax.random.split(rng)
    params["dense"] = _init_linear(sub, feat_dim, final_hidden_layers)
    rng, sub = jax.random.split(rng)
    # Final layer is zero-padded to a lane multiple for an unmasked lane-dense store.
    params["final"] = _init_linear(sub, final_hidden_layers, n_actions,
                                   pad_out_to=_round_up(n_actions, LANE))
    params["feature_dim"] = feat_dim
    return params


# ----------------------------------------------------------------------------
# Forward pass: one fused pallas_call
# ----------------------------------------------------------------------------
def qnetwork_forward(params, x: Dict[str, jnp.ndarray], keys: List[str]):
    B = x[keys[0]].shape[0]

    # Batch tiling: one full-B block for small batches; 256-row tiles otherwise.
    if B <= 256:
        TM, B_pad = B, B
    else:
        TM = 256
        B_pad = _round_up(B, TM)
    grid = (B_pad // TM,)

    args, in_specs = [], []

    # Per-key inputs (batch-tiled).
    for k in keys:
        xi = x[k].astype(jnp.float32)
        if B_pad != B:
            xi = jnp.pad(xi, ((0, B_pad - B), (0, 0)))
        args.append(xi)
        in_specs.append(pl.BlockSpec((TM, xi.shape[1]), lambda i: (i, 0)))

    # Per-key extractor weights (replicated across batch tiles).
    layers_per_key, feat_widths = [], []
    for k in keys:
        layers = params["extractor"][k]
        layers_per_key.append(len(layers))
        d = x[k].shape[1]
        for (w, b) in layers:
            args.append(w)
            in_specs.append(pl.BlockSpec(w.shape, lambda i: (0, 0)))
            args.append(b)
            in_specs.append(pl.BlockSpec(b.shape, lambda i: (0, 0)))
            d = w.shape[1]
        feat_widths.append(d)
    feat_dim = sum(feat_widths)

    # Head weights.
    wd, bd = params["dense"]
    wf, bf = params["final"]
    for t in (wd, bd, wf, bf):
        args.append(t)
        in_specs.append(pl.BlockSpec(t.shape, lambda i: (0, 0)))
    A_pad = wf.shape[1]

    kernel = _make_fused_kernel(len(keys), tuple(layers_per_key), tuple(feat_widths))

    q_pad = pl.pallas_call(
        kernel,
        out_shape=jax.ShapeDtypeStruct((B_pad, A_pad), jnp.float32),
        grid=grid,
        in_specs=in_specs,
        out_specs=pl.BlockSpec((TM, A_pad), lambda i: (i, 0)),
        scratch_shapes=[pltpu.VMEM((TM, feat_dim), jnp.float32)],
        compiler_params=pltpu.CompilerParams(
            dimension_semantics=("parallel",),      # v7x: shard batch tiles over 2 TCs
            vmem_limit_bytes=64 * 1024 * 1024,      # budget against v7x's 64 MiB VMEM
        ),
    )(*args)

    return q_pad[:B, :params["n_actions"]]


# ----------------------------------------------------------------------------
# Demo
# ----------------------------------------------------------------------------
if __name__ == "__main__":
    batch = 2
    n_actions = 4
    final_hidden = 32
    keys = ["obs", "vec"]
    kwargs = {"obs": {"input_dim": 16}, "vec": {"input_dim": 8}}
    hidden_layers = {"obs": [32, 32], "vec": [32]}

    root = jax.random.PRNGKey(0)
    k_params, k_obs, k_vec = jax.random.split(root, 3)

    params = build_qnetwork_params(
        n_actions, final_hidden, keys, kwargs, hidden_layers, k_params
    )

    x = {
        "obs": jax.random.normal(k_obs, (batch, kwargs["obs"]["input_dim"]), jnp.float32),
        "vec": jax.random.normal(k_vec, (batch, kwargs["vec"]["input_dim"]), jnp.float32),
    }

    q = qnetwork_forward(params, x, keys)
    jax.block_until_ready(q)
    assert q.shape == (batch, n_actions)
    assert bool(jnp.all(jnp.isfinite(q)))
    print("KERNEL_OK")
</pallas_src>

<mosaic_0001>
module attributes {stable_mosaic.version = 11 : i64} {
  func.func @kernel(%arg0: i32, %arg1: memref<2x16xf32, #tpu.memory_space<vmem>>, %arg2: memref<2x8xf32, #tpu.memory_space<vmem>>, %arg3: memref<16x32xbf16, #tpu.memory_space<vmem>>, %arg4: memref<1x32xf32, #tpu.memory_space<vmem>>, %arg5: memref<32x32xbf16, #tpu.memory_space<vmem>>, %arg6: memref<1x32xf32, #tpu.memory_space<vmem>>, %arg7: memref<8x32xbf16, #tpu.memory_space<vmem>>, %arg8: memref<1x32xf32, #tpu.memory_space<vmem>>, %arg9: memref<64x32xbf16, #tpu.memory_space<vmem>>, %arg10: memref<1x32xf32, #tpu.memory_space<vmem>>, %arg11: memref<32x128xbf16, #tpu.memory_space<vmem>>, %arg12: memref<1x128xf32, #tpu.memory_space<vmem>>, %arg13: memref<2x128xf32, #tpu.memory_space<vmem>>, %arg14: memref<2x64xf32, #tpu.memory_space<vmem>>) attributes {dimension_semantics = [#tpu.dimension_semantics<parallel>], iteration_bounds = array<i64: 1>, scalar_prefetch = 0 : i64, scratch_operands = 1 : i64, tpu.core_type = #tpu.core_type<tc>, window_params = [{transform_indices = @transform_0, window_bounds = array<i64: 2, 16>}, {transform_indices = @transform_1, window_bounds = array<i64: 2, 8>}, {pipeline_mode = #tpu.pipeline_mode<synchronous>, transform_indices = @transform_2, window_bounds = array<i64: 16, 32>}, {pipeline_mode = #tpu.pipeline_mode<synchronous>, transform_indices = @transform_3, window_bounds = array<i64: 1, 32>}, {pipeline_mode = #tpu.pipeline_mode<synchronous>, transform_indices = @transform_4, window_bounds = array<i64: 32, 32>}, {pipeline_mode = #tpu.pipeline_mode<synchronous>, transform_indices = @transform_5, window_bounds = array<i64: 1, 32>}, {pipeline_mode = #tpu.pipeline_mode<synchronous>, transform_indices = @transform_6, window_bounds = array<i64: 8, 32>}, {pipeline_mode = #tpu.pipeline_mode<synchronous>, transform_indices = @transform_7, window_bounds = array<i64: 1, 32>}, {pipeline_mode = #tpu.pipeline_mode<synchronous>, transform_indices = @transform_8, window_bounds = array<i64: 64, 32>}, {pipeline_mode = #tpu.pipeline_mode<synchronous>, transform_indices = @transform_9, window_bounds = array<i64: 1, 32>}, {pipeline_mode = #tpu.pipeline_mode<synchronous>, transform_indices = @transform_10, window_bounds = array<i64: 32, 128>}, {pipeline_mode = #tpu.pipeline_mode<synchronous>, transform_indices = @transform_11, window_bounds = array<i64: 1, 128>}, {transform_indices = @transform_12, window_bounds = array<i64: 2, 128>}]} {
    %c0 = arith.constant 0 : index
    %c0_0 = arith.constant 0 : index
    %0 = vector.load %arg1[%c0, %c0_0] : memref<2x16xf32, #tpu.memory_space<vmem>>, vector<2x16xf32>
    %c0_1 = arith.constant 0 : index
    %c0_2 = arith.constant 0 : index
    %1 = vector.load %arg3[%c0_1, %c0_2] : memref<16x32xbf16, #tpu.memory_space<vmem>>, vector<16x32xbf16>
    %c0_3 = arith.constant 0 : index
    %c0_4 = arith.constant 0 : index
    %2 = vector.load %arg4[%c0_3, %c0_4] : memref<1x32xf32, #tpu.memory_space<vmem>>, vector<1x32xf32>
    %3 = arith.truncf %0 : vector<2x16xf32> to vector<2x16xbf16>
    %cst = arith.constant dense<0.000000e+00> : vector<2x32xf32>
    %4 = tpu.matmul %3, %1, %cst {dimension_numbers = #tpu.dot_dimension_numbers<[1], [0], [0], [1], [0, 0, 1, 1], [], []>} : vector<2x16xbf16>, vector<16x32xbf16>, vector<2x32xf32> -> vector<2x32xf32>
    %5 = vector.broadcast %2 : vector<1x32xf32> to vector<2x32xf32>
    %6 = arith.addf %4, %5 : vector<2x32xf32>
    %cst_5 = arith.constant 0.000000e+00 : f32
    %7 = vector.broadcast %cst_5 : f32 to vector<2x32xf32>
    %8 = arith.maximumf %6, %7 : vector<2x32xf32>
    %c0_6 = arith.constant 0 : index
    %c0_7 = arith.constant 0 : index
    %9 = vector.load %arg5[%c0_6, %c0_7] : memref<32x32xbf16, #tpu.memory_space<vmem>>, vector<32x32xbf16>
    %c0_8 = arith.constant 0 : index
    %c0_9 = arith.constant 0 : index
    %10 = vector.load %arg6[%c0_8, %c0_9] : memref<1x32xf32, #tpu.memory_space<vmem>>, vector<1x32xf32>
    %11 = arith.truncf %8 : vector<2x32xf32> to vector<2x32xbf16>
    %cst_10 = arith.constant dense<0.000000e+00> : vector<2x32xf32>
    %12 = tpu.matmul %11, %9, %cst_10 {dimension_numbers = #tpu.dot_dimension_numbers<[1], [0], [0], [1], [0, 0, 1, 1], [], []>} : vector<2x32xbf16>, vector<32x32xbf16>, vector<2x32xf32> -> vector<2x32xf32>
    %13 = vector.broadcast %10 : vector<1x32xf32> to vector<2x32xf32>
    %14 = arith.addf %12, %13 : vector<2x32xf32>
    %cst_11 = arith.constant 0.000000e+00 : f32
    %15 = vector.broadcast %cst_11 : f32 to vector<2x32xf32>
    %16 = arith.maximumf %14, %15 : vector<2x32xf32>
    %c0_12 = arith.constant 0 : index
    %c0_13 = arith.constant 0 : index
    %17 = vector.load %arg14[%c0_12, %c0_13] : memref<2x64xf32, #tpu.memory_space<vmem>>, vector<2x32xf32>
    tpu.vector_store %arg14[%c0_12, %c0_13], %16 {strides = array<i32>} : memref<2x64xf32, #tpu.memory_space<vmem>>, vector<2x32xf32>,
    %c0_14 = arith.constant 0 : index
    %c0_15 = arith.constant 0 : index
    %18 = vector.load %arg2[%c0_14, %c0_15] : memref<2x8xf32, #tpu.memory_space<vmem>>, vector<2x8xf32>
    %c0_16 = arith.constant 0 : index
    %c0_17 = arith.constant 0 : index
    %19 = vector.load %arg7[%c0_16, %c0_17] : memref<8x32xbf16, #tpu.memory_space<vmem>>, vector<8x32xbf16>
    %c0_18 = arith.constant 0 : index
    %c0_19 = arith.constant 0 : index
    %20 = vector.load %arg8[%c0_18, %c0_19] : memref<1x32xf32, #tpu.memory_space<vmem>>, vector<1x32xf32>
    %21 = arith.truncf %18 : vector<2x8xf32> to vector<2x8xbf16>
    %cst_20 = arith.constant dense<0.000000e+00> : vector<2x32xf32>
    %22 = tpu.matmul %21, %19, %cst_20 {dimension_numbers = #tpu.dot_dimension_numbers<[1], [0], [0], [1], [0, 0, 1, 1], [], []>} : vector<2x8xbf16>, vector<8x32xbf16>, vector<2x32xf32> -> vector<2x32xf32>
    %23 = vector.broadcast %20 : vector<1x32xf32> to vector<2x32xf32>
    %24 = arith.addf %22, %23 : vector<2x32xf32>
    %cst_21 = arith.constant 0.000000e+00 : f32
    %25 = vector.broadcast %cst_21 : f32 to vector<2x32xf32>
    %26 = arith.maximumf %24, %25 : vector<2x32xf32>
    %c0_22 = arith.constant 0 : index
    %c32 = arith.constant 32 : index
    %27 = vector.load %arg14[%c0_22, %c32] : memref<2x64xf32, #tpu.memory_space<vmem>>, vector<2x32xf32>
    tpu.vector_store %arg14[%c0_22, %c32], %26 {strides = array<i32>} : memref<2x64xf32, #tpu.memory_space<vmem>>, vector<2x32xf32>,
    %c0_23 = arith.constant 0 : index
    %c0_24 = arith.constant 0 : index
    %28 = vector.load %arg14[%c0_23, %c0_24] : memref<2x64xf32, #tpu.memory_space<vmem>>, vector<2x64xf32>
    %29 = arith.truncf %28 : vector<2x64xf32> to vector<2x64xbf16>
    %c0_25 = arith.constant 0 : index
    %c0_26 = arith.constant 0 : index
    %30 = vector.load %arg9[%c0_25, %c0_26] : memref<64x32xbf16, #tpu.memory_space<vmem>>, vector<64x32xbf16>
    %cst_27 = arith.constant dense<0.000000e+00> : vector<2x32xf32>
    %31 = tpu.matmul %29, %30, %cst_27 {dimension_numbers = #tpu.dot_dimension_numbers<[1], [0], [0], [1], [0, 0, 1, 1], [], []>} : vector<2x64xbf16>, vector<64x32xbf16>, vector<2x32xf32> -> vector<2x32xf32>
    %c0_28 = arith.constant 0 : index
    %c0_29 = arith.constant 0 : index
    %32 = vector.load %arg10[%c0_28, %c0_29] : memref<1x32xf32, #tpu.memory_space<vmem>>, vector<1x32xf32>
    %33 = vector.broadcast %32 : vector<1x32xf32> to vector<2x32xf32>
    %34 = arith.addf %31, %33 : vector<2x32xf32>
    %cst_30 = arith.constant 0.000000e+00 : f32
    %35 = vector.broadcast %cst_30 : f32 to vector<2x32xf32>
    %36 = arith.maximumf %34, %35 : vector<2x32xf32>
    %37 = arith.truncf %36 : vector<2x32xf32> to vector<2x32xbf16>
    %c0_31 = arith.constant 0 : index
    %c0_32 = arith.constant 0 : index
    %38 = vector.load %arg11[%c0_31, %c0_32] : memref<32x128xbf16, #tpu.memory_space<vmem>>, vector<32x128xbf16>
    %cst_33 = arith.constant dense<0.000000e+00> : vector<2x128xf32>
    %39 = tpu.matmul %37, %38, %cst_33 {dimension_numbers = #tpu.dot_dimension_numbers<[1], [0], [0], [1], [0, 0, 1, 1], [], []>} : vector<2x32xbf16>, vector<32x128xbf16>, vector<2x128xf32> -> vector<2x128xf32>
    %c0_34 = arith.constant 0 : index
    %c0_35 = arith.constant 0 : index
    %40 = vector.load %arg12[%c0_34, %c0_35] : memref<1x128xf32, #tpu.memory_space<vmem>>, vector<1x128xf32>
    %41 = vector.broadcast %40 : vector<1x128xf32> to vector<2x128xf32>
    %42 = arith.addf %39, %41 : vector<2x128xf32>
    %c0_36 = arith.constant 0 : index
    %c0_37 = arith.constant 0 : index
    %43 = vector.load %arg13[%c0_36, %c0_37] : memref<2x128xf32, #tpu.memory_space<vmem>>, vector<2x128xf32>
    tpu.vector_store %arg13[%c0_36, %c0_37], %42 {strides = array<i32>} : memref<2x128xf32, #tpu.memory_space<vmem>>, vector<2x128xf32>,
    return
  }
  func.func @transform_0(%arg0: i32) -> (i32, i32) {
    %c0_i32 = arith.constant 0 : i32
    %c0_i32_0 = arith.constant 0 : i32
    return %arg0, %c0_i32 : i32, i32
  }
  func.func @transform_1(%arg0: i32) -> (i32, i32) {
    %c0_i32 = arith.constant 0 : i32
    %c0_i32_0 = arith.constant 0 : i32
    return %arg0, %c0_i32 : i32, i32
  }
  func.func @transform_2(%arg0: i32) -> (i32, i32) {
    %c0_i32 = arith.constant 0 : i32
    %c0_i32_0 = arith.constant 0 : i32
    %c0_i32_1 = arith.constant 0 : i32
    return %c0_i32, %c0_i32_0 : i32, i32
  }
  func.func @transform_3(%arg0: i32) -> (i32, i32) {
    %c0_i32 = arith.constant 0 : i32
    %c0_i32_0 = arith.constant 0 : i32
    %c0_i32_1 = arith.constant 0 : i32
    return %c0_i32, %c0_i32_0 : i32, i32
  }
  func.func @transform_4(%arg0: i32) -> (i32, i32) {
    %c0_i32 = arith.constant 0 : i32
    %c0_i32_0 = arith.constant 0 : i32
    %c0_i32_1 = arith.constant 0 : i32
    return %c0_i32, %c0_i32_0 : i32, i32
  }
  func.func @transform_5(%arg0: i32) -> (i32, i32) {
    %c0_i32 = arith.constant 0 : i32
    %c0_i32_0 = arith.constant 0 : i32
    %c0_i32_1 = arith.constant 0 : i32
    return %c0_i32, %c0_i32_0 : i32, i32
  }
  func.func @transform_6(%arg0: i32) -> (i32, i32) {
    %c0_i32 = arith.constant 0 : i32
    %c0_i32_0 = arith.constant 0 : i32
    %c0_i32_1 = arith.constant 0 : i32
    return %c0_i32, %c0_i32_0 : i32, i32
  }
  func.func @transform_7(%arg0: i32) -> (i32, i32) {
    %c0_i32 = arith.constant 0 : i32
    %c0_i32_0 = arith.constant 0 : i32
    %c0_i32_1 = arith.constant 0 : i32
    return %c0_i32, %c0_i32_0 : i32, i32
  }
  func.func @transform_8(%arg0: i32) -> (i32, i32) {
    %c0_i32 = arith.constant 0 : i32
    %c0_i32_0 = arith.constant 0 : i32
    %c0_i32_1 = arith.constant 0 : i32
    return %c0_i32, %c0_i32_0 : i32, i32
  }
  func.func @transform_9(%arg0: i32) -> (i32, i32) {
    %c0_i32 = arith.constant 0 : i32
    %c0_i32_0 = arith.constant 0 : i32
    %c0_i32_1 = arith.constant 0 : i32
    return %c0_i32, %c0_i32_0 : i32, i32
  }
  func.func @transform_10(%arg0: i32) -> (i32, i32) {
    %c0_i32 = arith.constant 0 : i32
    %c0_i32_0 = arith.constant 0 : i32
    %c0_i32_1 = arith.constant 0 : i32
    return %c0_i32, %c0_i32_0 : i32, i32
  }
  func.func @transform_11(%arg0: i32) -> (i32, i32) {
    %c0_i32 = arith.constant 0 : i32
    %c0_i32_0 = arith.constant 0 : i32
    %c0_i32_1 = arith.constant 0 : i32
    return %c0_i32, %c0_i32_0 : i32, i32
  }
  func.func @transform_12(%arg0: i32) -> (i32, i32) {
    %c0_i32 = arith.constant 0 : i32
    %c0_i32_0 = arith.constant 0 : i32
    return %arg0, %c0_i32 : i32, i32
  }
}

</mosaic_0001>

<bundles_post_ra>
// kernel: tpu_custom_call.1
= control target key start
LH: loop header
LB: loop body
LE: loop exit
PB: predicated region body
PF: predicated region fallthrough
CT: control target
= control target key end

     0   :  { %17 = vsyncpa [#allocation4], 0  ;;  %s1224_s0 = inlined_call_operand.hbm [shape: f32[2,16], index: 0, kind: input, shape index: {}]   ;;  %s1225_s1 = inlined_call_operand.hbm [shape: f32[2,8], index: 1, kind: input, shape index: {}]   ;;  %s1226_s2 = inlined_call_operand.hbm [shape: bf16[16,32], index: 2, kind: input, shape index: {}]   ;;  %s1227_s3 = inlined_call_operand.hbm [shape: f32[1,32], index: 3, kind: input, shape index: {}]   ;;  %s1228_s4 = inlined_call_operand.hbm [shape: bf16[32,32], index: 4, kind: input, shape index: {}]   ;;  %s1229_s5 = inlined_call_operand.hbm [shape: f32[1,32], index: 5, kind: input, shape index: {}]   ;;  %s1230_s6 = inlined_call_operand.hbm [shape: bf16[8,32], index: 6, kind: input, shape index: {}]   ;;  %s1231_s7 = inlined_call_operand.hbm [shape: f32[1,32], index: 7, kind: input, shape index: {}]   ;;  %s1232_s8 = inlined_call_operand.hbm [shape: bf16[64,32], index: 8, kind: input, shape index: {}]   ;;  %s1233_s9 = inlined_call_operand.hbm [shape: f32[1,32], index: 9, kind: input, shape index: {}]   ;;  %s1234_s10 = inlined_call_operand.hbm [shape: bf16[32,128], index: 10, kind: input, shape index: {}]   ;;  %s1235_s11 = inlined_call_operand.hbm [shape: f32[1,128], index: 11, kind: input, shape index: {}]   ;;  %s1236_s12 = inlined_call_operand.hbm [shape: f32[2,128], index: 12, kind: output, shape index: {}]  }
   0x1   :  { %18 = vsyncpa [#allocation7], 0 }
   0x2   :  { %19 = vsyncpa [#allocation10], 0 }
   0x3   :  { %20 = vsyncpa [#allocation13], 0 }
   0x4   :  { %21 = vsyncpa [#allocation16], 0 }
   0x5   :  { %22 = vsyncpa [#allocation19], 0 }
   0x6   :  { %23 = vsyncpa [#allocation22], 0 }
   0x7   :  { %24 = vsyncpa [#allocation5], 0  ;;  %s966_s21 = smov [#allocation6]   ;;  %s967_s23 = smov [#allocation9]  }
   0x8   :  { %s41_s22 = sshll.u32 %s966_s21, 4  ;;  %s63_s24 = sshll.u32 %s967_s23, 4  ;;  %s42_s22 = int_to_ptr.vmem [resolvable:$true] %s41_s22  ;;  %s64_s24 = int_to_ptr.vmem [resolvable:$true] %s63_s24 }
   0x9   :  { %s664_s27 = scalar_lea.hbm %s1225_s1, 32 }
   0xa   :  { %p665_p0 = scmp.ne.s32.totalorder %s1225_s1, %s664_s27  ;;  %p668_p1 = scmp.lt.u32.totalorder %s664_s27, %s1225_s1 }
   0xc   :  { %p670_p2 = pnand %p668_p1, %p665_p0 }
   0xe   :  { %673 = shalt.err (!%p670_p2)
}
   0xf   :  { %s674_s14 = scalar_lea.vmem %s42_s22, 32  ;;  %p679_p4 = scmp.lt.s32.totalorder %s42_s22, %s42_s22 }
  0x10   :  { %p675_p3 = scmp.ne.s32.totalorder %s42_s22, %s674_s14  ;;  %p680_p5 = scmp.lt.s32.totalorder %s674_s14, %s674_s14 }
  0x12   :  { %p681_p6 = por %p680_p5, %p679_p4 }
  0x14   :  { %p682_p7 = pnand %p681_p6, %p675_p3 }
  0x16   :  { %685 = shalt.err (!%p682_p7)
}
  0x17   :  { %44 = dma.hbm_to_vmem [thread:$0]  %s1225_s1, 32, %s42_s22, [#allocation7]  }
  0x18   :  { %s686_s19 = scalar_lea.hbm %s1227_s3, 16 }
  0x19   :  { %p687_p8 = scmp.ne.s32.totalorder %s1227_s3, %s686_s19  ;;  %p690_p9 = scmp.lt.u32.totalorder %s686_s19, %s1227_s3 }
  0x1b   :  { %p692_p10 = pnand %p690_p9, %p687_p8 }
  0x1d   :  { %695 = shalt.err (!%p692_p10)
}
  0x1e   :  { %s696_s26 = scalar_lea.vmem %s64_s24, 16  ;;  %s700_s27 = scalar_lea.vmem %s64_s24, 32 }
  0x1f   :  { %p697_p11 = scmp.ne.s32.totalorder %s64_s24, %s696_s26  ;;  %p701_p12 = scmp.lt.s32.totalorder %s64_s24, %s64_s24 }
  0x20   :  { %p702_p13 = scmp.lt.s32.totalorder %s700_s27, %s696_s26 }
  0x22   :  { %p703_p0 = por %p702_p13, %p701_p12 }
  0x24   :  { %p704_p1 = pnand %p703_p0, %p697_p11 }
  0x26   :  { %707 = shalt.err (!%p704_p1)
}
  0x27   :  { %66 = dma.hbm_to_vmem [thread:$0]  %s1227_s3, 16, %s64_s24, [#allocation10]  }
  0x28   :  { %s968_s28 = smov [#allocation12]   ;;  %s969_s30 = smov [#allocation15]  }
  0x29   :  { %s85_s29 = sshll.u32 %s968_s28, 4  ;;  %s105_s13 = sshll.u32 %s969_s30, 4  ;;  %s86_s29 = int_to_ptr.vmem [resolvable:$true] %s85_s29  ;;  %s106_s13 = int_to_ptr.vmem [resolvable:$true] %s105_s13 }
  0x2a   :  { %s708_s16 = scalar_lea.hbm %s1229_s5, 16 }
  0x2b   :  { %p709_p2 = scmp.ne.s32.totalorder %s1229_s5, %s708_s16  ;;  %p712_p3 = scmp.lt.u32.totalorder %s708_s16, %s1229_s5 }
  0x2d   :  { %p714_p4 = pnand %p712_p3, %p709_p2 }
  0x2f   :  { %717 = shalt.err (!%p714_p4)
}
  0x30   :  { %s718_s3 = scalar_lea.vmem %s86_s29, 16  ;;  %s722_s24 = scalar_lea.vmem %s86_s29, 32 }
  0x31   :  { %p719_p5 = scmp.ne.s32.totalorder %s86_s29, %s718_s3  ;;  %p723_p6 = scmp.lt.s32.totalorder %s86_s29, %s86_s29 }
  0x32   :  { %p724_p7 = scmp.lt.s32.totalorder %s722_s24, %s718_s3 }
  0x34   :  { %p725_p8 = por %p724_p7, %p723_p6 }
  0x36   :  { %p726_p9 = pnand %p725_p8, %p719_p5 }
  0x38   :  { %729 = shalt.err (!%p726_p9)
}
  0x39   :  { %88 = dma.hbm_to_vmem [thread:$0]  %s1229_s5, 16, %s86_s29, [#allocation13]  }
  0x3a   :  { %s730_s27 = scalar_lea.hbm %s1231_s7, 16 }
  0x3b   :  { %p731_p10 = scmp.ne.s32.totalorder %s1231_s7, %s730_s27  ;;  %p734_p11 = scmp.lt.u32.totalorder %s730_s27, %s1231_s7 }
  0x3d   :  { %p736_p12 = pnand %p734_p11, %p731_p10 }
  0x3f   :  { %739 = shalt.err (!%p736_p12)
}
  0x40   :  { %s740_s14 = scalar_lea.vmem %s106_s13, 16  ;;  %s744_s15 = scalar_lea.vmem %s106_s13, 32 }
  0x41   :  { %p741_p13 = scmp.ne.s32.totalorder %s106_s13, %s740_s14  ;;  %p745_p0 = scmp.lt.s32.totalorder %s106_s13, %s106_s13 }
  0x42   :  { %p746_p1 = scmp.lt.s32.totalorder %s744_s15, %s740_s14 }
  0x44   :  { %p747_p2 = por %p746_p1, %p745_p0 }
  0x46   :  { %p748_p3 = pnand %p747_p2, %p741_p13 }
  0x48   :  { %751 = shalt.err (!%p748_p3)
}
  0x49   :  { %108 = dma.hbm_to_vmem [thread:$0]  %s1231_s7, 16, %s106_s13, [#allocation16]  }
  0x4a   :  { %s970_s16 = smov [#allocation18]   ;;  %s971_s18 = smov [#allocation3]  }
  0x4b   :  { %s127_s17 = sshll.u32 %s970_s16, 4  ;;  %s31_s19 = sshll.u32 %s971_s18, 4  ;;  %s128_s17 = int_to_ptr.vmem [resolvable:$true] %s127_s17  ;;  %s32_s19 = int_to_ptr.vmem [resolvable:$true] %s31_s19 }
  0x4c   :  { %s752_s24 = scalar_lea.hbm %s1233_s9, 16 }
  0x4d   :  { %p753_p4 = scmp.ne.s32.totalorder %s1233_s9, %s752_s24  ;;  %p756_p5 = scmp.lt.u32.totalorder %s752_s24, %s1233_s9 }
  0x4f   :  { %p758_p6 = pnand %p756_p5, %p753_p4 }
  0x51   :  { %761 = shalt.err (!%p758_p6)
}
  0x52   :  { %s762_s7 = scalar_lea.vmem %s128_s17, 16  ;;  %s766_s13 = scalar_lea.vmem %s128_s17, 32 }
  0x53   :  { %p763_p7 = scmp.ne.s32.totalorder %s128_s17, %s762_s7  ;;  %p767_p8 = scmp.lt.s32.totalorder %s128_s17, %s128_s17 }
  0x54   :  { %p768_p9 = scmp.lt.s32.totalorder %s766_s13, %s762_s7 }
  0x56   :  { %p769_p10 = por %p768_p9, %p767_p8 }
  0x58   :  { %p770_p11 = pnand %p769_p10, %p763_p7 }
  0x5a   :  { %773 = shalt.err (!%p770_p11)
}
  0x5b   :  { %130 = dma.hbm_to_vmem [thread:$0]  %s1233_s9, 16, %s128_s17, [#allocation19]  }
  0x5c   :  { %s774_s30 = scalar_lea.hbm %s1224_s0, 32 }
  0x5d   :  { %p775_p12 = scmp.ne.s32.totalorder %s1224_s0, %s774_s30  ;;  %p778_p13 = scmp.lt.u32.totalorder %s774_s30, %s1224_s0 }
  0x5f   :  { %p780_p0 = pnand %p778_p13, %p775_p12 }
  0x61   :  { %783 = shalt.err (!%p780_p0)
}
  0x62   :  { %s784_s16 = scalar_lea.vmem %s32_s19, 32  ;;  %p789_p2 = scmp.lt.s32.totalorder %s32_s19, %s32_s19 }
  0x63   :  { %p785_p1 = scmp.ne.s32.totalorder %s32_s19, %s784_s16  ;;  %p790_p3 = scmp.lt.s32.totalorder %s784_s16, %s784_s16 }
  0x65   :  { %p791_p4 = por %p790_p3, %p789_p2 }
  0x67   :  { %p792_p5 = pnand %p791_p4, %p785_p1 }
  0x69   :  { %795 = shalt.err (!%p792_p5)
}
  0x6a   :  { %34 = dma.hbm_to_vmem [thread:$0]  %s1224_s0, 32, %s32_s19, [#allocation4]  }
  0x6b   :  { %s972_s18 = smov [#allocation8]   ;;  %s796_s21 = scalar_lea.hbm %s1226_s2, 128 }
  0x6c   :  { %s50_s20 = sshll.u32 %s972_s18, 4  ;;  %p797_p6 = scmp.ne.s32.totalorder %s1226_s2, %s796_s21  ;;  %s51_s20 = int_to_ptr.vmem [resolvable:$true] %s50_s20 }
  0x6d   :  { %p800_p7 = scmp.lt.u32.totalorder %s796_s21, %s1226_s2 }
  0x6f   :  { %p802_p8 = pnand %p800_p7, %p797_p6 }
  0x71   :  { %805 = shalt.err (!%p802_p8)
}
  0x72   :  { %s806_s13 = scalar_lea.vmem %s51_s20, 128  ;;  %p811_p10 = scmp.lt.s32.totalorder %s51_s20, %s51_s20 }
  0x73   :  { %p807_p9 = scmp.ne.s32.totalorder %s51_s20, %s806_s13  ;;  %p812_p11 = scmp.lt.s32.totalorder %s806_s13, %s806_s13 }
  0x75   :  { %p813_p12 = por %p812_p11, %p811_p10 }
  0x77   :  { %p814_p13 = pnand %p813_p12, %p807_p9 }
  0x79   :  { %817 = shalt.err (!%p814_p13)
}
  0x7a   :  { %s973_s0 = smov 64   ;;  %s974_s19 = smov 4  }
  0x7b   :  { %56 = dma.hbm_to_vmem [thread:$0]  %s1226_s2, 128, %s51_s20, [#allocation7], %s973_s0, %s973_s0, %s974_s19  }
  0x7c   :  { %s975_s22 = smov [#allocation11]   ;;  %s976_s30 = smov [#allocation14]  }
  0x7d   :  { %s72_s28 = sshll.u32 %s975_s22, 4  ;;  %s95_s14 = sshll.u32 %s976_s30, 4  ;;  %s73_s28 = int_to_ptr.vmem [resolvable:$true] %s72_s28  ;;  %s96_s14 = int_to_ptr.vmem [resolvable:$true] %s95_s14 }
  0x7e   :  { %s818_s29 = scalar_lea.hbm %s1228_s4, 256 }
  0x7f   :  { %p819_p0 = scmp.ne.s32.totalorder %s1228_s4, %s818_s29  ;;  %p822_p1 = scmp.lt.u32.totalorder %s818_s29, %s1228_s4 }
  0x81   :  { %p824_p2 = pnand %p822_p1, %p819_p0 }
  0x83   :  { %827 = shalt.err (!%p824_p2)
}
  0x84   :  { %s828_s2 = scalar_lea.vmem %s73_s28, 256  ;;  %p833_p4 = scmp.lt.s32.totalorder %s73_s28, %s73_s28 }
  0x85   :  { %p829_p3 = scmp.ne.s32.totalorder %s73_s28, %s828_s2  ;;  %p834_p5 = scmp.lt.s32.totalorder %s828_s2, %s828_s2 }
  0x87   :  { %p835_p6 = por %p834_p5, %p833_p4 }
  0x89   :  { %p836_p7 = pnand %p835_p6, %p829_p3 }
  0x8b   :  { %839 = shalt.err (!%p836_p7)
}
  0x8c   :  { %78 = dma.hbm_to_vmem [thread:$0]  %s1228_s4, 256, %s73_s28, [#allocation10], %s973_s0, %s973_s0, %s974_s19  }
  0x8d   :  { %s840_s23 = scalar_lea.hbm %s1230_s6, 64 }
  0x8e   :  { %p841_p8 = scmp.ne.s32.totalorder %s1230_s6, %s840_s23  ;;  %p844_p9 = scmp.lt.u32.totalorder %s840_s23, %s1230_s6 }
  0x90   :  { %p846_p10 = pnand %p844_p9, %p841_p8 }
  0x92   :  { %849 = shalt.err (!%p846_p10)
}
  0x93   :  { %s850_s27 = scalar_lea.vmem %s96_s14, 64  ;;  %p855_p12 = scmp.lt.s32.totalorder %s96_s14, %s96_s14 }
  0x94   :  { %p851_p11 = scmp.ne.s32.totalorder %s96_s14, %s850_s27  ;;  %p856_p13 = scmp.lt.s32.totalorder %s850_s27, %s850_s27 }
  0x96   :  { %p857_p0 = por %p856_p13, %p855_p12 }
  0x98   :  { %p858_p1 = pnand %p857_p0, %p851_p11 }
  0x9a   :  { %861 = shalt.err (!%p858_p1)
}
  0x9b   :  { %98 = dma.hbm_to_vmem [thread:$0]  %s1230_s6, 64, %s96_s14, [#allocation13]  }
  0x9c   :  { %s977_s22 = smov [#allocation17]   ;;  %s978_s30 = smov [#allocation20]  }
  0x9d   :  { %s114_s28 = sshll.u32 %s977_s22, 4  ;;  %s136_s15 = sshll.u32 %s978_s30, 4  ;;  %s115_s28 = int_to_ptr.vmem [resolvable:$true] %s114_s28  ;;  %s137_s15 = int_to_ptr.vmem [resolvable:$true] %s136_s15 }
  0x9e   :  { %s862_s16 = scalar_lea.hbm %s1232_s8, 512 }
  0x9f   :  { %p863_p2 = scmp.ne.s32.totalorder %s1232_s8, %s862_s16  ;;  %p866_p3 = scmp.lt.u32.totalorder %s862_s16, %s1232_s8 }
  0xa1   :  { %p868_p4 = pnand %p866_p3, %p863_p2 }
  0xa3   :  { %871 = shalt.err (!%p868_p4)
}
  0xa4   :  { %s872_s6 = scalar_lea.vmem %s115_s28, 512  ;;  %p877_p6 = scmp.lt.s32.totalorder %s115_s28, %s115_s28 }
  0xa5   :  { %p873_p5 = scmp.ne.s32.totalorder %s115_s28, %s872_s6  ;;  %p878_p7 = scmp.lt.s32.totalorder %s872_s6, %s872_s6 }
  0xa7   :  { %p879_p8 = por %p878_p7, %p877_p6 }
  0xa9   :  { %p880_p9 = pnand %p879_p8, %p873_p5 }
  0xab   :  { %883 = shalt.err (!%p880_p9)
}
  0xac   :  { %120 = dma.hbm_to_vmem [thread:$0]  %s1232_s8, 512, %s115_s28, [#allocation16], %s973_s0, %s973_s0, %s974_s19  }
  0xad   :  { %s884_s21 = scalar_lea.hbm %s1234_s10, 256 }
  0xae   :  { %p885_p10 = scmp.ne.s32.totalorder %s1234_s10, %s884_s21  ;;  %p888_p11 = scmp.lt.u32.totalorder %s884_s21, %s1234_s10 }
  0xb0   :  { %p890_p12 = pnand %p888_p11, %p885_p10 }
  0xb2   :  { %893 = shalt.err (!%p890_p12)
}
  0xb3   :  { %s894_s13 = scalar_lea.vmem %s137_s15, 256  ;;  %p899_p0 = scmp.lt.s32.totalorder %s137_s15, %s137_s15 }
  0xb4   :  { %p895_p13 = scmp.ne.s32.totalorder %s137_s15, %s894_s13  ;;  %p900_p1 = scmp.lt.s32.totalorder %s894_s13, %s894_s13 }
  0xb6   :  { %p901_p2 = por %p900_p1, %p899_p0 }
  0xb8   :  { %p902_p3 = pnand %p901_p2, %p895_p13 }
  0xba   :  { %905 = shalt.err (!%p902_p3)
}
  0xbb   :  { %142 = dma.hbm_to_vmem [thread:$0]  %s1234_s10, 256, %s137_s15, [#allocation19], %s973_s0, %s973_s0, %s974_s19  }
  0xbc   :  { %s979_s4 = smov [#allocation21]   ;;  %s906_s30 = scalar_lea.hbm %s1235_s11, 16 }
  0xbd   :  { %s149_s1 = sshll.u32 %s979_s4, 4  ;;  %p907_p4 = scmp.ne.s32.totalorder %s1235_s11, %s906_s30  ;;  %s150_s1 = int_to_ptr.vmem [resolvable:$true] %s149_s1 }
  0xbe   :  { %p910_p5 = scmp.lt.u32.totalorder %s906_s30, %s1235_s11 }
  0xc0   :  { %p912_p6 = pnand %p910_p5, %p907_p4 }
  0xc2   :  { %915 = shalt.err (!%p912_p6)
}
  0xc3   :  { %s916_s17 = scalar_lea.vmem %s150_s1, 16  ;;  %s920_s10 = scalar_lea.vmem %s150_s1, 32 }
  0xc4   :  { %p917_p7 = scmp.ne.s32.totalorder %s150_s1, %s916_s17  ;;  %p921_p8 = scmp.lt.s32.totalorder %s150_s1, %s150_s1 }
  0xc5   :  { %p922_p9 = scmp.lt.s32.totalorder %s920_s10, %s916_s17 }
  0xc7   :  { %p923_p10 = por %p922_p9, %p921_p8 }
  0xc9   :  { %p924_p11 = pnand %p923_p10, %p917_p7 }
  0xcb   :  { %927 = shalt.err (!%p924_p11)
}
  0xcc   :  { %152 = dma.hbm_to_vmem [thread:$0]  %s1235_s11, 16, %s150_s1, [#allocation22]  }
  0xcd   :  { %950 = dma.done.wait [#allocation4], 32  }
  0xce   :  { %951 = vsyncadd [#allocation4], 4294967264 }
  0xcf   :  { %952 = dma.done.wait [#allocation7], 160  }
  0xd0   :  { %953 = vsyncadd [#allocation7], 4294967136 }
  0xd1   :  { %954 = dma.done.wait [#allocation10], 272  }
  0xd2   :  { %955 = vsyncadd [#allocation10], 4294967024 }
  0xd3   :  { %956 = dma.done.wait [#allocation13], 80  }
  0xd4   :  { %957 = vsyncadd [#allocation13], 4294967216 }
  0xd5   :  { %958 = dma.done.wait [#allocation16], 528  }
  0xd6   :  { %959 = vsyncadd [#allocation16], 4294966768 }
  0xd7   :  { %960 = dma.done.wait [#allocation19], 272  }
  0xd8   :  { %961 = vsyncadd [#allocation19], 4294967024 }
  0xd9   :  { %962 = dma.done.wait [#allocation22], 16  }
  0xda   :  { %963 = vsyncadd [#allocation22], 4294967280  ;;  %v980_v0 = vmov 0.0   ;;  %vm981_vm0 = vmmov 0   ;;  %vm337_vm1 = vcmask 1043456   ;;  %v655_v1 = vld [vmem:[#allocation8] sm:$0xff]  }
  0xdb   :  { %597 = vmatprep.subr.bf16.mxu0 %v980_v0  ;;  %599 = vmatprep.mubr.msk.bf16.mxu0 %vm981_vm0, %v980_v0  ;;  %v190_v2 = vld [vmem:[#allocation3] sm:$0x3]  ;;  %vm207_vm2 = vcmask 130048   ;;  %v323_v6 = vld [vmem:[#allocation6] sm:$0x3]  ;;  %vm333_vm3 = vcmask 64512  }
  0xdc   :  { %603 = vmatprep.subr.bf16.mxu1 %v980_v0  ;;  %607 = vmatprep.mubr.msk.bf16.mxu1 %vm981_vm0, %v980_v0  ;;  %v324_v3 = vld [vmem:[#allocation14] sm:$0xf]  ;;  %v194_v4 = vpack.c.bf16 %v190_v2, %v190_v2  ;;  %v326_v7 = vpack.c.bf16 %v323_v6, %v323_v6  ;;  %v656_v8 = vld [vmem:[#allocation11] sm:$0xff]   ;;  %v657_v9 = vld [vmem:[#allocation11 + $0x8] sm:$0xff]   ;;  %vm276_vm4 = vcmask 261120   ;;  %s982_s11 = smov 32  }
  0xdd   :  { %598 = vmatpush3.bf16.msra.mxu0 %v655_v1  ;;  %v339_v5 = vsel %vm337_vm1, %v324_v3, 0  ;;  %604 = vmatpush3.bf16.msra.mxu1 %v656_v8  ;;  %v563_v10 = vld [vmem:[#allocation9] ss:$0 sm:$0xff]  ;;  %v570_v18 = vld [vmem:[#allocation15] ss:$0 sm:$0xff]  ;;  %v659_v26 = vld [vmem:[#allocation17 + $0x8] sm:$0xff]  }
  0xde   :  { %611 = vmatprep.subr.bf16.mxu0 %v980_v0  ;;  %605 = vmatprep.subr.bf16.mxu1 %v980_v0  ;;  %v658_v25 = vld [vmem:[#allocation17] sm:$0xff]   ;;  %v660_v27 = vld [vmem:[#allocation17 + $0x10] sm:$0xff]   ;;  %v661_v28 = vld [vmem:[#allocation17 + $0x18] sm:$0xff]   ;;  %vm321_vm5 = vcmask 254976   ;;  %vm386_vm6 = vcmask 517376   ;;  %vm429_vm7 = vcmask 523264  }
  0xdf   :  { %v662_v29 = vld [vmem:[#allocation20] sm:$0xff]   ;;  %v566_v30 = vld [vmem:[#allocation12] ss:$0 sm:$0xff]  ;;  %v663_v40 = vld [vmem:[#allocation20 + $0x8] sm:$0xff]   ;;  %s983_s15 = smov [#allocation23]  }
  0xe0   :  { %600 = vmatmul.mubr.msk.bf16.vlgmr.msra.gmra.mrb[0].mxu0 %vm207_vm2, %v194_v4  ;;  %v572_v41 = vld [vmem:[#allocation18] ss:$0 sm:$0xff]  ;;  %v578_v49 = vld [vmem:[#allocation21] ss:$0 sm:$0xff]  ;;  %s548_s18 = sshll.u32 %s983_s15, 4  ;;  %s549_s18 = int_to_ptr.vmem [resolvable:$true] %s548_s18 }
  0xe1   :  { %612 = vmatpush3.bf16.msra.mxu0 %v339_v5  ;;  %613 = vmatprep.mubr.msk.bf16.mxu0 %vm981_vm0, %v980_v0  ;;  %s928_s2 = scalar_lea.vmem %s549_s18, 32  ;;  %p933_p13 = scmp.lt.s32.totalorder %s549_s18, %s549_s18 }
  0xe2   :  { %629 = vmatprep.subr.bf16.mxu0 %v980_v0  ;;  %606 = vmatpush3.bf16.msra.mxu1 %v657_v9  ;;  %p929_p12 = scmp.ne.s32.totalorder %s549_s18, %s928_s2  ;;  %p934_p0 = scmp.lt.s32.totalorder %s928_s2, %s928_s2 }
  0xe3   :  { %617 = vmatprep.subr.bf16.mxu1 %v980_v0 }
  0xe4   :  { %p935_p1 = por %p934_p0, %p933_p13 }
  0xe6   :  { %p936_p2 = pnand %p935_p1, %p929_p12 }
  0xe8   :  { %614 = vmatmul.mubr.msk.bf16.vlgmr.msra.gmra.mrb[4].mxu0 %vm333_vm3, %v326_v7 }
  0xe9   :  { %633 = vmatprep.mubr.msk.bf16.mxu0 %vm981_vm0, %v980_v0  ;;  %630 = vmatpush3.bf16.msra.mxu0 %v662_v29 }
  0xea   :  { %631 = vmatprep.subr.bf16.mxu0 %v980_v0 }
  0xed   :  { %632 = vmatpush3.bf16.msra.mxu0 %v663_v40 }
 0x1b3   :  { %v245_v11 = vpop.f32.mrb[0].mxu0 }
 0x1b4   :  { %v246_v12 = vadd.f32 %v563_v10, %v245_v11  ;;  %v601_v13 = vpop.f32.mrb[1].mxu0 }
 0x1b5   :  { %v248_v14 = vpop.f32.mrb[2].mxu0 }
 0x1b6   :  { %v251_v15 = vmax.f32 %v246_v12, 0.0  ;;  %v602_v16 = vpop.f32.mrb[3].mxu0 }
 0x1b8   :  { %v257_v17 = vpack.c.bf16 %v251_v15, %v251_v15 }
 0x1ba   :  { %608 = vmatmul.mubr.msk.bf16.vlgmr.msra.gmra.mrb[0].mxu1 %vm276_vm4, %v257_v17 }
 0x1bb   :  { %v375_v19 = vpop.f32.mrb[4].mxu0  ;;  %625 = vmatprep.mubr.msk.bf16.mxu1 %vm981_vm0, %v980_v0  ;;  %618 = vmatpush3.bf16.msra.mxu1 %v658_v25 }
 0x1bc   :  { %v376_v20 = vadd.f32 %v570_v18, %v375_v19  ;;  %v615_v21 = vpop.f32.mrb[5].mxu0  ;;  %619 = vmatprep.subr.bf16.mxu1 %v980_v0 }
 0x1bd   :  { %v378_v22 = vpop.f32.mrb[6].mxu0 }
 0x1be   :  { %v381_v23 = vmax.f32 %v376_v20, 0.0  ;;  %v616_v24 = vpop.f32.mrb[7].mxu0 }
 0x1bf   :  { %620 = vmatpush3.bf16.msra.mxu1 %v659_v26 }
 0x1c0   :  { %383 = vrot.lane.b32.xlu0 %v381_v23, %s982_s11  ;;  %621 = vmatprep.subr.bf16.mxu1 %v980_v0 }
 0x1c3   :  { %622 = vmatpush3.bf16.msra.mxu1 %v660_v27 }
 0x1c4   :  { %623 = vmatprep.subr.bf16.mxu1 %v980_v0 }
 0x1c7   :  { %624 = vmatpush3.bf16.msra.mxu1 %v661_v28 }
 0x232   :  { %v384_v37 = vpop.permute.xlu0 %383 }
 0x28d   :  { %v314_v31 = vpop.f32.mrb[0].mxu1 }
 0x28e   :  { %v315_v32 = vadd.f32 %v566_v30, %v314_v31  ;;  %v609_v33 = vpop.f32.mrb[1].mxu1 }
 0x28f   :  { %v317_v34 = vpop.f32.mrb[2].mxu1 }
 0x290   :  { %v320_v35 = vmax.f32 %v315_v32, 0.0  ;;  %v610_v36 = vpop.f32.mrb[3].mxu1 }
 0x292   :  { %322 = vst.msk [vmem:[#allocation2] sm:$0x3] %vm321_vm5, %v320_v35 }
 0x293   :  { %387 = vst.msk [vmem:[#allocation2] sm:$0x3] %vm386_vm6, %v384_v37 }
 0x29a   :  { %v388_v38 = vld [vmem:[#allocation2] sm:$0x3] }
 0x29b   :  { %v389_v39 = vpack.c.bf16 %v388_v38, %v388_v38 }
 0x29d   :  { %626 = vmatmul.mubr.msk.bf16.vlgmr.msra.gmra.mrb[4].mxu1 %vm429_vm7, %v389_v39 }
 0x370   :  { %v467_v42 = vpop.f32.mrb[4].mxu1 }
 0x371   :  { %v468_v43 = vadd.f32 %v572_v41, %v467_v42  ;;  %v627_v44 = vpop.f32.mrb[5].mxu1 }
 0x372   :  { %v470_v45 = vpop.f32.mrb[6].mxu1 }
 0x373   :  { %v473_v46 = vmax.f32 %v468_v43, 0.0  ;;  %v628_v47 = vpop.f32.mrb[7].mxu1 }
 0x375   :  { %v474_v48 = vpack.c.bf16 %v473_v46, %v473_v46 }
 0x377   :  { %634 = vmatmul.mubr.msk.bf16.vlgmr.msra.gmra.mrb[8].mxu0 %vm276_vm4, %v474_v48 }
 0x44a   :  { %v535_v50 = vpop.f32.mrb[8].mxu0 }
 0x44b   :  { %v536_v51 = vadd.f32 %v578_v49, %v535_v50  ;;  %v635_v52 = vpop.f32.mrb[9].mxu0 }
 0x44c   :  { %v538_v53 = vpop.f32.mrb[10].mxu0 }
 0x44d   :  { %541 = vst [vmem:[#allocation23] sm:$0x3] %v536_v51  ;;  %v636_v54 = vpop.f32.mrb[11].mxu0 }
 0x44e   :  { %939 = shalt.err (!%p936_p2)
}
 0x44f   :  { %s940_s20 = scalar_lea.hbm %s1236_s12, 32 }
 0x450   :  { %p941_p3 = scmp.ne.s32.totalorder %s1236_s12, %s940_s20  ;;  %p944_p4 = scmp.lt.u32.totalorder %s940_s20, %s1236_s12 }
 0x452   :  { %p946_p5 = pnand %p944_p4, %p941_p3 }
 0x454   :  { %949 = shalt.err (!%p946_p5)
}
 0x455   :  { %551 = dma.vmem_to_hbm [thread:$0]  %s549_s18, 32, %s1236_s12, [#allocation5]  }
 0x456   :  { %964 = dma.done.wait [#allocation5], 32  }
 0x457   :  { %965 = vsyncadd [#allocation5], 4294967264 }
 0x458   :  { %555 = vsyncpa [#allocation4], 1 }
 0x459   :  { %556 = vsyncpa [#allocation7], 1 }
 0x45a   :  { %557 = vsyncpa [#allocation10], 1 }
 0x45b   :  { %558 = vsyncpa [#allocation13], 1 }
 0x45c   :  { %559 = vsyncpa [#allocation16], 1 }
 0x45d   :  { %560 = vsyncpa [#allocation19], 1 }
 0x45e   :  { %561 = vsyncpa [#allocation22], 1 }
 0x45f   :  { %562 = vsyncpa [#allocation5], 1 }

</bundles_post_ra>
